<compile_context>
chip_gen: v5e
topology: v5e:2x2
jax: 0.10.0
libtpu: 0.0.40
codegen_flags: <defaults>
</compile_context>

<pallas_src>
import functools
import math

import jax
import jax.numpy as jnp
from jax.experimental import pallas as pl
from jax.experimental.pallas import tpu as pltpu

_BN_EPS = 1e-5


def _round_up(x, m):
    return (x + m - 1) // m * m


def _triple(v):
    return (v,) * 3 if isinstance(v, int) else tuple(v)


def _parse_conv_args(kernel_size, stride, padding):
    ks = _triple(kernel_size)
    st = _triple(stride)
    pad = tuple((k - 1) // 2 for k in ks) if padding is None else _triple(padding)
    return ks, st, pad


# ----------------------------------------------------------------------------
# Pallas kernel: tiled MXU matmul (bf16 in, f32 accumulate into output block)
# ----------------------------------------------------------------------------
def _matmul_kernel(a_ref, b_ref, o_ref):
    @pl.when(pl.program_id(2) == 0)
    def _():
        o_ref[...] = jnp.zeros_like(o_ref)

    o_ref[...] += jnp.dot(a_ref[...], b_ref[...],
                          preferred_element_type=jnp.float32)


def _largest_tile(padded_dim, cap):
    """Largest multiple of 128 that divides padded_dim, capped."""
    best = 128
    t = 256
    while t <= min(padded_dim, cap):
        if padded_dim % t == 0:
            best = t
        t += 128
    return best


def matmul_bf16(a, b):
    """(M,K) @ (K,N) on the MXU: bf16 operands, f32 result."""
    M, K = a.shape
    K2, N = b.shape
    assert K == K2
    Kp = _round_up(K, 128)
    TK = _largest_tile(Kp, 1024)
    TM = min(512, _round_up(M, 8))
    Mp = _round_up(M, TM)
    TN = 256 if _round_up(N, 128) % 256 == 0 else 128
    Np = _round_up(N, TN)
    a = jnp.pad(a.astype(jnp.bfloat16), ((0, Mp - M), (0, Kp - K)))
    b = jnp.pad(b.astype(jnp.bfloat16), ((0, Kp - K), (0, Np - N)))
    out = pl.pallas_call(
        _matmul_kernel,
        out_shape=jax.ShapeDtypeStruct((Mp, Np), jnp.float32),
        grid_spec=pltpu.PrefetchScalarGridSpec(
            num_scalar_prefetch=0,
            grid=(Mp // TM, Np // TN, Kp // TK),
            in_specs=[pl.BlockSpec((TM, TK), lambda i, j, k: (i, k)),
                      pl.BlockSpec((TK, TN), lambda i, j, k: (k, j))],
            out_specs=pl.BlockSpec((TM, TN), lambda i, j, k: (i, j))),
        compiler_params=pltpu.CompilerParams(
            dimension_semantics=("parallel", "parallel", "arbitrary"),
            vmem_limit_bytes=48 * 1024 * 1024),
    )(a, b)
    return out[:M, :N]


# ----------------------------------------------------------------------------
# Pallas kernel: fused BatchNorm (eval) + ReLU, lane-dense, bf16 output
# ----------------------------------------------------------------------------
def _affine_relu_kernel(x_ref, s_ref, b_ref, o_ref):
    y = x_ref[...] * s_ref[...] + b_ref[...]          # f32 compute
    o_ref[...] = jnp.maximum(y, 0.0).astype(o_ref.dtype)


def bn_relu_bf16(x, scale, shift):
    """relu(x * scale + shift) per channel (last axis). f32 compute, bf16 out."""
    shape = x.shape
    C = shape[-1]
    M = x.size // C
    r = 1
    if C < 128 and 128 % C == 0 and M % (128 // C) == 0:
        r = 128 // C                    # fold rows into lanes -> 128-wide tiles
    Cw = r * C
    rows = M // r
    x2 = x.reshape(rows, Cw)
    s = jnp.tile(scale.astype(jnp.float32), r).reshape(1, Cw)
    b = jnp.tile(shift.astype(jnp.float32), r).reshape(1, Cw)
    Cp = _round_up(Cw, 128)
    TR = min(1024, _round_up(rows, 8))
    rows_p = _round_up(rows, TR)
    if Cp != Cw or rows_p != rows:
        x2 = jnp.pad(x2, ((0, rows_p - rows), (0, Cp - Cw)))
        s = jnp.pad(s, ((0, 0), (0, Cp - Cw)))
        b = jnp.pad(b, ((0, 0), (0, Cp - Cw)))
    out = pl.pallas_call(
        _affine_relu_kernel,
        out_shape=jax.ShapeDtypeStruct((rows_p, Cp), jnp.bfloat16),
        grid=(rows_p // TR,),
        in_specs=[pl.BlockSpec((TR, Cp), lambda i: (i, 0)),
                  pl.BlockSpec((1, Cp), lambda i: (0, 0)),
                  pl.BlockSpec((1, Cp), lambda i: (0, 0))],
        out_specs=pl.BlockSpec((TR, Cp), lambda i: (i, 0)),
        compiler_params=pltpu.CompilerParams(
            dimension_semantics=("parallel",)),
    )(x2, s, b)
    return out[:rows, :Cw].reshape(shape)


# ----------------------------------------------------------------------------
# Conv glue: im2col in JAX (bf16), weights in matmul-ready layout
# ----------------------------------------------------------------------------
def _im2col(x, ksize, stride, padding):
    N, D, H, W, C = x.shape
    kd, kh, kw = ksize
    sd, sh, sw = stride
    pd, ph, pw = padding
    xp = jnp.pad(x, ((0, 0), (pd, pd), (ph, ph), (pw, pw), (0, 0)))
    Do = (D + 2 * pd - kd) // sd + 1
    Ho = (H + 2 * ph - kh) // sh + 1
    Wo = (W + 2 * pw - kw) // sw + 1
    cols = []
    for i in range(kd):
        for j in range(kh):
            for k in range(kw):
                cols.append(xp[:, i:i + (Do - 1) * sd + 1:sd,
                               j:j + (Ho - 1) * sh + 1:sh,
                               k:k + (Wo - 1) * sw + 1:sw, :])
    patches = jnp.stack(cols, axis=-2)            # (N, Do, Ho, Wo, k3, C)
    return patches.reshape(N * Do * Ho * Wo, kd * kh * kw * C), (N, Do, Ho, Wo)


def weight_to_matmul(w, groups):
    """PyTorch Conv3d weight (Cout, Cin/g, kd, kh, kw) -> dense (k3*Cin, Cout)
    matrix (block-diagonal over groups); rows are tap-major / cin-minor to
    match _im2col's column order."""
    Cout, Cin_pg, kd, kh, kw = w.shape
    Cin = Cin_pg * groups
    cout_pg = Cout // groups
    k3 = kd * kh * kw
    wt = jnp.transpose(w, (2, 3, 4, 1, 0)).reshape(k3, Cin_pg, Cout)
    full = jnp.zeros((k3, Cin, Cout), w.dtype)
    for g in range(groups):
        full = full.at[:, g * Cin_pg:(g + 1) * Cin_pg,
                       g * cout_pg:(g + 1) * cout_pg].set(
                           wt[:, :, g * cout_pg:(g + 1) * cout_pg])
    return full.reshape(k3 * Cin, Cout)


# ----------------------------------------------------------------------------
# Conv3d_Block forward (and a pure-JAX f32 reference)
# ----------------------------------------------------------------------------
def conv3d_block_fwd(x_ncdhw, params, *, kernel_size, stride=1, groups=1,
                     padding=None):
    """h = ReLU(BN(x)); h = Conv3d(h, bias=False).   x: (N, Cin, D, H, W) f32."""
    ks, st, pad = _parse_conv_args(kernel_size, stride, padding)

    x = jnp.transpose(x_ncdhw, (0, 2, 3, 4, 1))            # NDHWC
    inv_std = 1.0 / jnp.sqrt(params["var"] + _BN_EPS)
    scale = params["gamma"] * inv_std
    shift = params["beta"] - params["mean"] * scale
    h = bn_relu_bf16(x, scale, shift)                       # fused Pallas kernel

    w_mat = weight_to_matmul(params["weight"], groups).astype(jnp.bfloat16)
    cout = params["weight"].shape[0]
    if ks == (1, 1, 1) and st == (1, 1, 1) and pad == (0, 0, 0):
        N, D, H, W, C = h.shape
        out = matmul_bf16(h.reshape(-1, C), w_mat).reshape(N, D, H, W, cout)
    else:
        cols, (n, Do, Ho, Wo) = _im2col(h, ks, st, pad)
        out = matmul_bf16(cols, w_mat).reshape(n, Do, Ho, Wo, cout)
    return jnp.transpose(out, (0, 4, 1, 2, 3))              # back to NCDHW


def conv3d_block_ref(x, params, *, kernel_size, stride=1, groups=1, padding=None):
    ks, st, pad = _parse_conv_args(kernel_size, stride, padding)
    inv_std = 1.0 / jnp.sqrt(params["var"] + _BN_EPS)
    scale = (params["gamma"] * inv_std)[None, :, None, None, None]
    shift = (params["beta"] - params["mean"] * params["gamma"] * inv_std
             )[None, :, None, None, None]
    h = jnp.maximum(x * scale + shift, 0.0)
    return jax.lax.conv_general_dilated(
        h, params["weight"], window_strides=st,
        padding=[(p, p) for p in pad],
        dimension_numbers=("NCDHW", "OIDHW", "NCDHW"),
        feature_group_count=groups,
        precision=jax.lax.Precision.HIGHEST)


# ----------------------------------------------------------------------------
if __name__ == "__main__":
    key = jax.random.PRNGKey(0)

    def make_params(k, cin, cout, ksz, groups):
        kw, kg, kb, km, kv = jax.random.split(k, 5)
        fan_in = (cin // groups) * ksz * ksz * ksz
        weight = jax.random.normal(kw, (cout, cin // groups, ksz, ksz, ksz),
                                   jnp.float32) * math.sqrt(2.0 / fan_in)
        return {
            "weight": weight,
            "gamma": 1.0 + 0.1 * jax.random.normal(kg, (cin,), jnp.float32),
            "beta": 0.1 * jax.random.normal(kb, (cin,), jnp.float32),
            "mean": 0.1 * jax.random.normal(km, (cin,), jnp.float32),
            "var": jax.random.uniform(kv, (cin,), jnp.float32, 0.5, 1.5),
        }

    # (batch, cin, cout, spatial, kernel, stride, groups) -- small shapes
    configs = [
        (2, 4, 8, 16, 3, 1, 1),   # main config (NCDHW x: (2, 4, 16, 16, 16))
        (1, 8, 8, 8, 3, 2, 2),    # strided, grouped variant
    ]
    for idx, (n, cin, cout, sp, ksz, s, g) in enumerate(configs):
        kx, kp = jax.random.split(jax.random.fold_in(key, idx))
        x = jax.random.normal(kx, (n, cin, sp, sp, sp), jnp.float32)
        params = make_params(kp, cin, cout, ksz, g)

        fwd = jax.jit(functools.partial(conv3d_block_fwd, kernel_size=ksz,
                                        stride=s, groups=g))
        out = jax.block_until_ready(fwd(x, params))
        ref = conv3d_block_ref(x, params, kernel_size=ksz, stride=s, groups=g)

        so = sp // s
        assert out.shape == (n, cout, so, so, so), out.shape
        assert bool(jnp.all(jnp.isfinite(out)))
        err = float(jnp.max(jnp.abs(out - ref)))
        assert err < 0.1, f"config {idx}: max abs err {err}"

    print("KERNEL_OK")
</pallas_src>

<mosaic_0001>
module attributes {stable_mosaic.version = 11 : i64} {
  func.func @_affine_relu_kernel(%arg0: i32, %arg1: memref<256x128xf32, #tpu.memory_space<vmem>>, %arg2: memref<1x128xf32, #tpu.memory_space<vmem>>, %arg3: memref<1x128xf32, #tpu.memory_space<vmem>>, %arg4: memref<256x128xbf16, #tpu.memory_space<vmem>>) attributes {dimension_semantics = [#tpu.dimension_semantics<parallel>], iteration_bounds = array<i64: 1>, scalar_prefetch = 0 : i64, scratch_operands = 0 : i64, tpu.core_type = #tpu.core_type<tc>, window_params = [{transform_indices = @transform_0, window_bounds = array<i64: 256, 128>}, {pipeline_mode = #tpu.pipeline_mode<synchronous>, transform_indices = @transform_1, window_bounds = array<i64: 1, 128>}, {pipeline_mode = #tpu.pipeline_mode<synchronous>, transform_indices = @transform_2, window_bounds = array<i64: 1, 128>}, {transform_indices = @transform_3, window_bounds = array<i64: 256, 128>}]} {
    %c0 = arith.constant 0 : index
    %c0_0 = arith.constant 0 : index
    %0 = vector.load %arg1[%c0, %c0_0] : memref<256x128xf32, #tpu.memory_space<vmem>>, vector<256x128xf32>
    %c0_1 = arith.constant 0 : index
    %c0_2 = arith.constant 0 : index
    %1 = vector.load %arg2[%c0_1, %c0_2] : memref<1x128xf32, #tpu.memory_space<vmem>>, vector<1x128xf32>
    %2 = vector.broadcast %1 : vector<1x128xf32> to vector<256x128xf32>
    %3 = arith.mulf %0, %2 : vector<256x128xf32>
    %c0_3 = arith.constant 0 : index
    %c0_4 = arith.constant 0 : index
    %4 = vector.load %arg3[%c0_3, %c0_4] : memref<1x128xf32, #tpu.memory_space<vmem>>, vector<1x128xf32>
    %5 = vector.broadcast %4 : vector<1x128xf32> to vector<256x128xf32>
    %6 = arith.addf %3, %5 : vector<256x128xf32>
    %cst = arith.constant 0.000000e+00 : f32
    %7 = vector.broadcast %cst : f32 to vector<256x128xf32>
    %8 = arith.maximumf %6, %7 : vector<256x128xf32>
    %9 = arith.truncf %8 : vector<256x128xf32> to vector<256x128xbf16>
    %c0_5 = arith.constant 0 : index
    %c0_6 = arith.constant 0 : index
    %10 = vector.load %arg4[%c0_5, %c0_6] : memref<256x128xbf16, #tpu.memory_space<vmem>>, vector<256x128xbf16>
    tpu.vector_store %arg4[%c0_5, %c0_6], %9 {strides = array<i32>} : memref<256x128xbf16, #tpu.memory_space<vmem>>, vector<256x128xbf16>,
    return
  }
  func.func @transform_0(%arg0: i32) -> (i32, i32) {
    %c0_i32 = arith.constant 0 : i32
    %c0_i32_0 = arith.constant 0 : i32
    return %arg0, %c0_i32 : i32, i32
  }
  func.func @transform_1(%arg0: i32) -> (i32, i32) {
    %c0_i32 = arith.constant 0 : i32
    %c0_i32_0 = arith.constant 0 : i32
    %c0_i32_1 = arith.constant 0 : i32
    return %c0_i32, %c0_i32_0 : i32, i32
  }
  func.func @transform_2(%arg0: i32) -> (i32, i32) {
    %c0_i32 = arith.constant 0 : i32
    %c0_i32_0 = arith.constant 0 : i32
    %c0_i32_1 = arith.constant 0 : i32
    return %c0_i32, %c0_i32_0 : i32, i32
  }
  func.func @transform_3(%arg0: i32) -> (i32, i32) {
    %c0_i32 = arith.constant 0 : i32
    %c0_i32_0 = arith.constant 0 : i32
    return %arg0, %c0_i32 : i32, i32
  }
}

module attributes {stable_mosaic.version = 11 : i64} {
  func.func @_matmul_kernel(%arg0: i32, %arg1: i32, %arg2: i32, %arg3: memref<512x128xbf16, #tpu.memory_space<vmem>>, %arg4: memref<128x128xbf16, #tpu.memory_space<vmem>>, %arg5: memref<512x128xf32, #tpu.memory_space<vmem>>) attributes {dimension_semantics = [#tpu.dimension_semantics<parallel>, #tpu.dimension_semantics<parallel>, #tpu.dimension_semantics<arbitrary>], iteration_bounds = array<i64: 16, 1, 1>, scalar_prefetch = 0 : i64, scratch_operands = 0 : i64, tpu.core_type = #tpu.core_type<tc>, window_params = [{transform_indices = @transform_0, window_bounds = array<i64: 512, 128>}, {transform_indices = @transform_1, window_bounds = array<i64: 128, 128>}, {transform_indices = @transform_2, window_bounds = array<i64: 512, 128>}]} {
    %c0_i32 = arith.constant 0 : i32
    %0 = arith.cmpi eq, %arg2, %c0_i32 : i32
    %1 = arith.extui %0 : i1 to i32
    %c0_i32_0 = arith.constant 0 : i32
    %2 = arith.cmpi ne, %1, %c0_i32_0 : i32
    scf.if %2 {
      %cst_8 = arith.constant 0.000000e+00 : f32
      %9 = vector.broadcast %cst_8 : f32 to vector<512x128xf32>
      %c0_9 = arith.constant 0 : index
      %c0_10 = arith.constant 0 : index
      %10 = vector.load %arg5[%c0_9, %c0_10] : memref<512x128xf32, #tpu.memory_space<vmem>>, vector<512x128xf32>
      tpu.vector_store %arg5[%c0_9, %c0_10], %9 {strides = array<i32>} : memref<512x128xf32, #tpu.memory_space<vmem>>, vector<512x128xf32>,
    } else {
    }
    %c0 = arith.constant 0 : index
    %c0_1 = arith.constant 0 : index
    %3 = vector.load %arg5[%c0, %c0_1] : memref<512x128xf32, #tpu.memory_space<vmem>>, vector<512x128xf32>
    %c0_2 = arith.constant 0 : index
    %c0_3 = arith.constant 0 : index
    %4 = vector.load %arg3[%c0_2, %c0_3] : memref<512x128xbf16, #tpu.memory_space<vmem>>, vector<512x128xbf16>
    %c0_4 = arith.constant 0 : index
    %c0_5 = arith.constant 0 : index
    %5 = vector.load %arg4[%c0_4, %c0_5] : memref<128x128xbf16, #tpu.memory_space<vmem>>, vector<128x128xbf16>
    %cst = arith.constant dense<0.000000e+00> : vector<512x128xf32>
    %6 = tpu.matmul %4, %5, %cst {dimension_numbers = #tpu.dot_dimension_numbers<[1], [0], [0], [1], [0, 0, 1, 1], [], []>} : vector<512x128xbf16>, vector<128x128xbf16>, vector<512x128xf32> -> vector<512x128xf32>
    %7 = arith.addf %3, %6 : vector<512x128xf32>
    %c0_6 = arith.constant 0 : index
    %c0_7 = arith.constant 0 : index
    %8 = vector.load %arg5[%c0_6, %c0_7] : memref<512x128xf32, #tpu.memory_space<vmem>>, vector<512x128xf32>
    tpu.vector_store %arg5[%c0_6, %c0_7], %7 {strides = array<i32>} : memref<512x128xf32, #tpu.memory_space<vmem>>, vector<512x128xf32>,
    return
  }
  func.func @transform_0(%arg0: i32, %arg1: i32, %arg2: i32) -> (i32, i32) {
    %c0_i32 = arith.constant 0 : i32
    return %arg0, %arg2 : i32, i32
  }
  func.func @transform_1(%arg0: i32, %arg1: i32, %arg2: i32) -> (i32, i32) {
    %c0_i32 = arith.constant 0 : i32
    return %arg2, %arg1 : i32, i32
  }
  func.func @transform_2(%arg0: i32, %arg1: i32, %arg2: i32) -> (i32, i32) {
    %c0_i32 = arith.constant 0 : i32
    return %arg0, %arg1 : i32, i32
  }
}

</mosaic_0001>

<bundles_post_ra>
// kernel: tile.13
= control target key start
LH: loop header
LB: loop body
LE: loop exit
PB: predicated region body
PF: predicated region fallthrough
CT: control target
= control target key end

     0   :  { %s40_s0 = inlined_call_operand.vmem [shape: f32[4], index: 0, kind: input, shape index: {}]   ;;  %s41_s1 = inlined_call_operand.vmem [shape: f32[32,4], index: 1, kind: output, shape index: {}]  }
   0x1   :  { %v4_v0 = vld [vmem:[%s40_s0] ss:$0 sm:$0xff] }
   0x2   :  { %5 = vst [vmem:[%s41_s1] sm:$0xff] %v4_v0 }
   0x3   :  { %12 = vst [vmem:[%s41_s1 + $0x8] sm:$0xff] %v4_v0 }
   0x4   :  { %13 = vst [vmem:[%s41_s1 + $0x10] sm:$0xff] %v4_v0 }
   0x5   :  { %14 = vst [vmem:[%s41_s1 + $0x18] sm:$0xff] %v4_v0 }

// kernel: tile.14
= control target key start
LH: loop header
LB: loop body
LE: loop exit
PB: predicated region body
PF: predicated region fallthrough
CT: control target
= control target key end

     0   :  { %s259_s10 = smov 124   ;;  %s260_s11 = smov 116   ;;  %vm3_vm0 = vcmask 31744   ;;  %vm9_vm1 = vcmask 1048544   ;;  %vm15_vm2 = vcmask 1015744   ;;  %vm21_vm3 = vcmask 982944   ;;  %s399_s0 = inlined_call_operand.vmem [shape: f32[32,4], index: 0, kind: input, shape index: {}]   ;;  %s400_s1 = inlined_call_operand.vmem [shape: f32[1,128], index: 1, kind: output, shape index: {}]  }
   0x1   :  { %v197_v0 = vld [vmem:[%s399_s0 + $0x1f] sm:$0x1]   ;;  %v199_v1 = vld [vmem:[%s399_s0 + $0x1d] sm:$0x1]   ;;  %v201_v2 = vld [vmem:[%s399_s0 + $0x1b] sm:$0x1]  }
   0x2   :  { %7 = vrot.lane.b32.xlu0 %v197_v0, %s259_s10  ;;  %19 = vrot.lane.b32.xlu1 %v199_v1, %s260_s11  ;;  %s261_s14 = smov 108   ;;  %v198_v3 = vld [vmem:[%s399_s0 + $0x1e] sm:$0x1]   ;;  %v200_v4 = vld [vmem:[%s399_s0 + $0x1c] sm:$0x1]   ;;  %s262_s19 = smov 120  }
   0x3   :  { %31 = vrot.lane.b32.xlu2 %v201_v2, %s261_s14  ;;  %s263_s20 = smov 112   ;;  %v202_v5 = vld [vmem:[%s399_s0 + $0x1a] sm:$0x1]   ;;  %s264_s23 = smov 104   ;;  %v203_v6 = vld [vmem:[%s399_s0 + $0x19] sm:$0x1]  }
   0x4   :  { %v204_v7 = vld [vmem:[%s399_s0 + $0x18] sm:$0x1]   ;;  %s265_s28 = smov 100   ;;  %s266_s29 = smov 96   ;;  %v205_v8 = vld [vmem:[%s399_s0 + $0x17] sm:$0x1]  }
   0x5   :  { %s267_s3 = smov 92   ;;  %v206_v9 = vld [vmem:[%s399_s0 + $0x16] sm:$0x1]   ;;  %v207_v10 = vld [vmem:[%s399_s0 + $0x15] sm:$0x1]   ;;  %s268_s8 = smov 88  }
   0x6   :  { %s269_s9 = smov 84   ;;  %v208_v11 = vld [vmem:[%s399_s0 + $0x14] sm:$0x1]   ;;  %s270_s12 = smov 80   ;;  %v209_v12 = vld [vmem:[%s399_s0 + $0x13] sm:$0x1]  }
   0x7   :  { %v210_v13 = vld [vmem:[%s399_s0 + $0x12] sm:$0x1]   ;;  %s271_s17 = smov 76   ;;  %s272_s18 = smov 72   ;;  %v211_v14 = vld [vmem:[%s399_s0 + $0x11] sm:$0x1]  }
   0x8   :  { %s273_s21 = smov 68   ;;  %v212_v15 = vld [vmem:[%s399_s0 + $0x10] sm:$0x1]   ;;  %v213_v16 = vld [vmem:[%s399_s0 + $0xf] sm:$0x1]   ;;  %s274_s26 = smov 64  }
   0x9   :  { %s275_s27 = smov 60   ;;  %v214_v17 = vld [vmem:[%s399_s0 + $0xe] sm:$0x1]   ;;  %s276_s30 = smov 56   ;;  %v215_v18 = vld [vmem:[%s399_s0 + $0xd] sm:$0x1]  }
   0xa   :  { %13 = vrot.lane.b32.xlu0 %v198_v3, %s262_s19  ;;  %25 = vrot.lane.b32.xlu1 %v200_v4, %s263_s20  ;;  %v216_v19 = vld [vmem:[%s399_s0 + $0xc] sm:$0x1]   ;;  %s277_s6 = smov 52   ;;  %s278_s7 = smov 48   ;;  %v217_v20 = vld [vmem:[%s399_s0 + $0xb] sm:$0x1]  }
   0xb   :  { %37 = vrot.lane.b32.xlu2 %v202_v5, %s264_s23  ;;  %s279_s10 = smov 44   ;;  %v218_v21 = vld [vmem:[%s399_s0 + $0xa] sm:$0x1]   ;;  %v219_v22 = vld [vmem:[%s399_s0 + $0x9] sm:$0x1]   ;;  %s280_s15 = smov 40  }
   0xc   :  { %s281_s16 = smov 36   ;;  %v220_v23 = vld [vmem:[%s399_s0 + $0x8] sm:$0x1]   ;;  %s282_s19 = smov 32   ;;  %v221_v24 = vld [vmem:[%s399_s0 + $0x7] sm:$0x1]  }
   0xd   :  { %v222_v25 = vld [vmem:[%s399_s0 + $0x6] sm:$0x1]   ;;  %s283_s24 = smov 28   ;;  %s284_s25 = smov 24   ;;  %v223_v26 = vld [vmem:[%s399_s0 + $0x5] sm:$0x1]  }
   0xe   :  { %v224_v27 = vld [vmem:[%s399_s0 + $0x4] sm:$0x1]   ;;  %v225_v28 = vld [vmem:[%s399_s0 + $0x3] sm:$0x1]   ;;  %s286_s4 = smov 16   ;;  %s287_s5 = smov 12  }
   0xf   :  { %v226_v29 = vld [vmem:[%s399_s0 + $0x2] sm:$0x1]   ;;  %v227_v30 = vld [vmem:[%s399_s0 + $0x1] sm:$0x1]   ;;  %s289_s11 = smov 4   ;;  %vm27_vm4 = vcmask 950144  }
  0x10   :  { %v2_v31 = vld [vmem:[%s399_s0] sm:$0x1]   ;;  %vm33_vm5 = vcmask 917344   ;;  %vm39_vm6 = vcmask 884544   ;;  %vm45_vm7 = vcmask 851744   ;;  %vm51_vm8 = vcmask 818944  }
  0x11   :  { %4 = vst.msk [vmem:[#allocation0] sm:$0x1] %vm3_vm0, %v2_v31   ;;  %vm57_vm9 = vcmask 786144   ;;  %vm63_vm10 = vcmask 753344   ;;  %vm69_vm11 = vcmask 720544   ;;  %vm75_vm12 = vcmask 687744  }
  0x12   :  { %43 = vrot.lane.b32.xlu0 %v203_v6, %s265_s28  ;;  %49 = vrot.lane.b32.xlu1 %v204_v7, %s266_s29  ;;  %s285_s28 = smov 20   ;;  %vm81_vm13 = vcmask 654944   ;;  %vm87_vm14 = vcmask 622144   ;;  %vm93_vm15 = vcmask 589344   ;;  %vm99_vm0 = vcmask 556544  }
  0x13   :  { %55 = vrot.lane.b32.xlu2 %v205_v8, %s267_s3 }
  0x1a   :  { %61 = vrot.lane.b32.xlu0 %v206_v9, %s268_s8  ;;  %67 = vrot.lane.b32.xlu1 %v207_v10, %s269_s9  ;;  %s288_s8 = smov 8  }
  0x1b   :  { %73 = vrot.lane.b32.xlu2 %v208_v11, %s270_s12 }
  0x22   :  { %79 = vrot.lane.b32.xlu0 %v209_v12, %s271_s17  ;;  %85 = vrot.lane.b32.xlu1 %v210_v13, %s272_s18 }
  0x23   :  { %91 = vrot.lane.b32.xlu2 %v211_v14, %s273_s21 }
  0x2a   :  { %97 = vrot.lane.b32.xlu0 %v212_v15, %s274_s26  ;;  %103 = vrot.lane.b32.xlu1 %v213_v16, %s275_s27 }
  0x2b   :  { %109 = vrot.lane.b32.xlu2 %v214_v17, %s276_s30 }
  0x32   :  { %115 = vrot.lane.b32.xlu0 %v215_v18, %s277_s6  ;;  %121 = vrot.lane.b32.xlu1 %v216_v19, %s278_s7 }
  0x33   :  { %127 = vrot.lane.b32.xlu2 %v217_v20, %s279_s10 }
  0x3a   :  { %133 = vrot.lane.b32.xlu0 %v218_v21, %s280_s15  ;;  %139 = vrot.lane.b32.xlu1 %v219_v22, %s281_s16 }
  0x3b   :  { %145 = vrot.lane.b32.xlu2 %v220_v23, %s282_s19 }
  0x42   :  { %151 = vrot.lane.b32.xlu0 %v221_v24, %s283_s24  ;;  %157 = vrot.lane.b32.xlu1 %v222_v25, %s284_s25 }
  0x43   :  { %163 = vrot.lane.b32.xlu2 %v223_v26, %s285_s28 }
  0x4a   :  { %169 = vrot.lane.b32.xlu0 %v224_v27, %s286_s4  ;;  %175 = vrot.lane.b32.xlu1 %v225_v28, %s287_s5 }
  0x4b   :  { %181 = vrot.lane.b32.xlu2 %v226_v29, %s288_s8 }
  0x52   :  { %187 = vrot.lane.b32.xlu0 %v227_v30, %s289_s11 }
  0x5d   :  { %v32_v32 = vpop.permute.xlu2 %31  }
  0x65   :  { %v38_v33 = vpop.permute.xlu2 %37  }
  0x6d   :  { %v56_v34 = vpop.permute.xlu2 %55  }
  0x74   :  { %v8_v35 = vpop.permute.xlu0 %7   ;;  %v20_v36 = vpop.permute.xlu1 %19  }
  0x75   :  { %10 = vst.msk [vmem:[#allocation0] sm:$0x1] %vm9_vm1, %v8_v35   ;;  %v74_v37 = vpop.permute.xlu2 %73   ;;  %vm105_vm1 = vcmask 523744  }
  0x7c   :  { %v14_v38 = vpop.permute.xlu0 %13   ;;  %v26_v39 = vpop.permute.xlu1 %25  }
  0x7d   :  { %16 = vst.msk [vmem:[#allocation0] sm:$0x1] %vm15_vm2, %v14_v38   ;;  %v92_v40 = vpop.permute.xlu2 %91   ;;  %vm111_vm2 = vcmask 490944  }
  0x7e   :  { %22 = vst.msk [vmem:[#allocation0] sm:$0x1] %vm21_vm3, %v20_v36   ;;  %vm117_vm3 = vcmask 458144  }
  0x7f   :  { %28 = vst.msk [vmem:[#allocation0] sm:$0x1] %vm27_vm4, %v26_v39   ;;  %vm123_vm4 = vcmask 425344  }
  0x80   :  { %34 = vst.msk [vmem:[#allocation0] sm:$0x1] %vm33_vm5, %v32_v32   ;;  %vm129_vm5 = vcmask 392544  }
  0x81   :  { %40 = vst.msk [vmem:[#allocation0] sm:$0x1] %vm39_vm6, %v38_v33   ;;  %vm135_vm6 = vcmask 359744  }
  0x84   :  { %v44_v41 = vpop.permute.xlu0 %43   ;;  %v50_v42 = vpop.permute.xlu1 %49  }
  0x85   :  { %46 = vst.msk [vmem:[#allocation0] sm:$0x1] %vm45_vm7, %v44_v41   ;;  %v110_v43 = vpop.permute.xlu2 %109   ;;  %vm141_vm7 = vcmask 326944  }
  0x86   :  { %52 = vst.msk [vmem:[#allocation0] sm:$0x1] %vm51_vm8, %v50_v42   ;;  %vm147_vm8 = vcmask 294144  }
  0x87   :  { %58 = vst.msk [vmem:[#allocation0] sm:$0x1] %vm57_vm9, %v56_v34   ;;  %vm153_vm9 = vcmask 261344  }
  0x8c   :  { %v62_v44 = vpop.permute.xlu0 %61   ;;  %v68_v45 = vpop.permute.xlu1 %67  }
  0x8d   :  { %64 = vst.msk [vmem:[#allocation0] sm:$0x1] %vm63_vm10, %v62_v44   ;;  %v128_v46 = vpop.permute.xlu2 %127   ;;  %vm159_vm10 = vcmask 228544  }
  0x8e   :  { %70 = vst.msk [vmem:[#allocation0] sm:$0x1] %vm69_vm11, %v68_v45   ;;  %vm165_vm11 = vcmask 195744  }
  0x8f   :  { %76 = vst.msk [vmem:[#allocation0] sm:$0x1] %vm75_vm12, %v74_v37   ;;  %vm171_vm12 = vcmask 162944  }
  0x94   :  { %v80_v47 = vpop.permute.xlu0 %79   ;;  %v86_v48 = vpop.permute.xlu1 %85  }
  0x95   :  { %82 = vst.msk [vmem:[#allocation0] sm:$0x1] %vm81_vm13, %v80_v47   ;;  %v146_v49 = vpop.permute.xlu2 %145   ;;  %vm177_vm13 = vcmask 130144  }
  0x96   :  { %88 = vst.msk [vmem:[#allocation0] sm:$0x1] %vm87_vm14, %v86_v48   ;;  %vm183_vm14 = vcmask 97344  }
  0x97   :  { %94 = vst.msk [vmem:[#allocation0] sm:$0x1] %vm93_vm15, %v92_v40   ;;  %vm189_vm15 = vcmask 64544  }
  0x9c   :  { %v98_v50 = vpop.permute.xlu0 %97   ;;  %v104_v51 = vpop.permute.xlu1 %103  }
  0x9d   :  { %100 = vst.msk [vmem:[#allocation0] sm:$0x1] %vm99_vm0, %v98_v50   ;;  %v164_v52 = vpop.permute.xlu2 %163  }
  0x9e   :  { %106 = vst.msk [vmem:[#allocation0] sm:$0x1] %vm105_vm1, %v104_v51  }
  0x9f   :  { %112 = vst.msk [vmem:[#allocation0] sm:$0x1] %vm111_vm2, %v110_v43  }
  0xa4   :  { %v116_v53 = vpop.permute.xlu0 %115   ;;  %v122_v54 = vpop.permute.xlu1 %121  }
  0xa5   :  { %118 = vst.msk [vmem:[#allocation0] sm:$0x1] %vm117_vm3, %v116_v53   ;;  %v182_v55 = vpop.permute.xlu2 %181  }
  0xa6   :  { %124 = vst.msk [vmem:[#allocation0] sm:$0x1] %vm123_vm4, %v122_v54  }
  0xa7   :  { %130 = vst.msk [vmem:[#allocation0] sm:$0x1] %vm129_vm5, %v128_v46  }
  0xac   :  { %v134_v56 = vpop.permute.xlu0 %133   ;;  %v140_v57 = vpop.permute.xlu1 %139  }
  0xad   :  { %136 = vst.msk [vmem:[#allocation0] sm:$0x1] %vm135_vm6, %v134_v56  }
  0xae   :  { %142 = vst.msk [vmem:[#allocation0] sm:$0x1] %vm141_vm7, %v140_v57  }
  0xaf   :  { %148 = vst.msk [vmem:[#allocation0] sm:$0x1] %vm147_vm8, %v146_v49  }
  0xb4   :  { %v152_v58 = vpop.permute.xlu0 %151   ;;  %v158_v59 = vpop.permute.xlu1 %157  }
  0xb5   :  { %154 = vst.msk [vmem:[#allocation0] sm:$0x1] %vm153_vm9, %v152_v58  }
  0xb6   :  { %160 = vst.msk [vmem:[#allocation0] sm:$0x1] %vm159_vm10, %v158_v59  }
  0xb7   :  { %166 = vst.msk [vmem:[#allocation0] sm:$0x1] %vm165_vm11, %v164_v52  }
  0xbc   :  { %v170_v60 = vpop.permute.xlu0 %169   ;;  %v176_v61 = vpop.permute.xlu1 %175  }
  0xbd   :  { %172 = vst.msk [vmem:[#allocation0] sm:$0x1] %vm171_vm12, %v170_v60  }
  0xbe   :  { %178 = vst.msk [vmem:[#allocation0] sm:$0x1] %vm177_vm13, %v176_v61  }
  0xbf   :  { %184 = vst.msk [vmem:[#allocation0] sm:$0x1] %vm183_vm14, %v182_v55  }
  0xc4   :  { %v188_v62 = vpop.permute.xlu0 %187  }
  0xc5   :  { %190 = vst.msk [vmem:[#allocation0] sm:$0x1] %vm189_vm15, %v188_v62  }
  0xcc   :  { %v193_v63 = vld [vmem:[#allocation0] sm:$0x1] }
  0xcd   :  { %196 = vst [vmem:[%s400_s1] sm:$0x1] %v193_v63 }

// kernel: conv3d_block_fwd.2
= control target key start
LH: loop header
LB: loop body
LE: loop exit
PB: predicated region body
PF: predicated region fallthrough
CT: control target
= control target key end

     0   :  { %s553_s0 = inlined_call_operand.vmem [shape: f32[256,128], index: 0, kind: input, shape index: {}]   ;;  %s554_s1 = inlined_call_operand.vmem [shape: f32[1,128], index: 1, kind: input, shape index: {}]   ;;  %s555_s2 = inlined_call_operand.vmem [shape: f32[1,128], index: 2, kind: input, shape index: {}]   ;;  %s556_s3 = inlined_call_operand.vmem [shape: bf16[256,128], index: 3, kind: output, shape index: {}]  }
   0x1   :  { %v14_v0 = vld [vmem:[%s553_s0] sm:$0xff]  ;;  %v15_v1 = vld [vmem:[%s553_s0 + $0x8] sm:$0xff]  ;;  %v16_v4 = vld [vmem:[%s553_s0 + $0x10] sm:$0xff] }
   0x2   :  { %v344_v2 = vld [vmem:[%s554_s1] ss:$0 sm:$0xff]  ;;  %v17_v5 = vld [vmem:[%s553_s0 + $0x18] sm:$0xff]  ;;  %v19_v11 = vld [vmem:[%s553_s0 + $0x28] sm:$0xff] }
   0x3   :  { %v349_v3 = vld [vmem:[%s555_s2] ss:$0 sm:$0xff]  ;;  %v50_v7 = vmul.f32 %v344_v2, %v14_v0  ;;  %v51_v8 = vmul.f32 %v344_v2, %v15_v1  ;;  %v52_v9 = vmul.f32 %v344_v2, %v16_v4  ;;  %v53_v10 = vmul.f32 %v344_v2, %v17_v5  ;;  %v20_v12 = vld [vmem:[%s553_s0 + $0x30] sm:$0xff]  ;;  %v21_v13 = vld [vmem:[%s553_s0 + $0x38] sm:$0xff] }
   0x4   :  { %v18_v6 = vld [vmem:[%s553_s0 + $0x20] sm:$0xff]  ;;  %v55_v15 = vmul.f32 %v344_v2, %v19_v11  ;;  %v56_v16 = vmul.f32 %v344_v2, %v20_v12  ;;  %v57_v17 = vmul.f32 %v344_v2, %v21_v13  ;;  %v23_v27 = vld [vmem:[%s553_s0 + $0x48] sm:$0xff]  ;;  %v24_v32 = vld [vmem:[%s553_s0 + $0x50] sm:$0xff] }
   0x5   :  { %v54_v14 = vmul.f32 %v344_v2, %v18_v6  ;;  %v86_v18 = vadd.f32 %v349_v3, %v50_v7  ;;  %v87_v19 = vadd.f32 %v349_v3, %v51_v8  ;;  %v88_v20 = vadd.f32 %v349_v3, %v52_v9  ;;  %v22_v26 = vld [vmem:[%s553_s0 + $0x40] sm:$0xff]  ;;  %v25_v33 = vld [vmem:[%s553_s0 + $0x58] sm:$0xff]  ;;  %v27_v39 = vld [vmem:[%s553_s0 + $0x68] sm:$0xff] }
   0x6   :  { %v89_v21 = vadd.f32 %v349_v3, %v53_v10  ;;  %v91_v23 = vadd.f32 %v349_v3, %v55_v15  ;;  %v92_v24 = vadd.f32 %v349_v3, %v56_v16  ;;  %v93_v25 = vadd.f32 %v349_v3, %v57_v17  ;;  %v26_v38 = vld [vmem:[%s553_s0 + $0x60] sm:$0xff]  ;;  %v28_v44 = vld [vmem:[%s553_s0 + $0x70] sm:$0xff]  ;;  %v29_v45 = vld [vmem:[%s553_s0 + $0x78] sm:$0xff] }
   0x7   :  { %v90_v22 = vadd.f32 %v349_v3, %v54_v14  ;;  %v118_v28 = vmax.f32 %v86_v18, 0.0  ;;  %v119_v29 = vmax.f32 %v87_v19, 0.0  ;;  %v120_v30 = vmax.f32 %v88_v20, 0.0  ;;  %v30_v58 = vld [vmem:[%s553_s0 + $0x80] sm:$0xff]  ;;  %v31_v63 = vld [vmem:[%s553_s0 + $0x88] sm:$0xff]  ;;  %v32_v6 = vld [vmem:[%s553_s0 + $0x90] sm:$0xff] }
   0x8   :  { %v121_v31 = vmax.f32 %v89_v21, 0.0  ;;  %v123_v35 = vmax.f32 %v91_v23, 0.0  ;;  %v124_v36 = vmax.f32 %v92_v24, 0.0  ;;  %v125_v37 = vmax.f32 %v93_v25, 0.0  ;;  %v33_v7 = vld [vmem:[%s553_s0 + $0x98] sm:$0xff]  ;;  %v34_v12 = vld [vmem:[%s553_s0 + $0xa0] sm:$0xff] }
   0x9   :  { %v122_v34 = vmax.f32 %v90_v22, 0.0  ;;  %v221_v40 = vpack.c.bf16 %v119_v29, %v118_v28  ;;  %v58_v42 = vmul.f32 %v344_v2, %v22_v26  ;;  %v59_v43 = vmul.f32 %v344_v2, %v23_v27  ;;  %v35_v13 = vld [vmem:[%s553_s0 + $0xa8] sm:$0xff]  ;;  %v36_v18 = vld [vmem:[%s553_s0 + $0xb0] sm:$0xff]  ;;  %v37_v23 = vld [vmem:[%s553_s0 + $0xb8] sm:$0xff] }
   0xa   :  { %v226_v41 = vpack.c.bf16 %v121_v31, %v120_v30  ;;  %v236_v47 = vpack.c.bf16 %v125_v37, %v124_v36  ;;  %v60_v48 = vmul.f32 %v344_v2, %v24_v32  ;;  %v61_v49 = vmul.f32 %v344_v2, %v25_v33  ;;  %v38_v28 = vld [vmem:[%s553_s0 + $0xc0] sm:$0xff]  ;;  %v39_v37 = vld [vmem:[%s553_s0 + $0xc8] sm:$0xff] }
   0xb   :  { %v231_v46 = vpack.c.bf16 %v123_v35, %v122_v34  ;;  %222 = vst [vmem:[%s556_s3] sm:$0xff] %v221_v40   ;;  %v94_v50 = vadd.f32 %v349_v3, %v58_v42  ;;  %v95_v51 = vadd.f32 %v349_v3, %v59_v43  ;;  %v62_v52 = vmul.f32 %v344_v2, %v26_v38  ;;  %v40_v42 = vld [vmem:[%s553_s0 + $0xd0] sm:$0xff]  ;;  %v41_v43 = vld [vmem:[%s553_s0 + $0xd8] sm:$0xff] }
   0xc   :  { %v63_v53 = vmul.f32 %v344_v2, %v27_v39  ;;  %298 = vst [vmem:[%s556_s3 + $0x8] sm:$0xff] %v226_v41   ;;  %v96_v54 = vadd.f32 %v349_v3, %v60_v48  ;;  %v97_v55 = vadd.f32 %v349_v3, %v61_v49  ;;  %v64_v56 = vmul.f32 %v344_v2, %v28_v44  ;;  %v42_v48 = vld [vmem:[%s553_s0 + $0xe0] sm:$0xff]  ;;  %v43_v49 = vld [vmem:[%s553_s0 + $0xe8] sm:$0xff] }
   0xd   :  { %v65_v57 = vmul.f32 %v344_v2, %v29_v45  ;;  %299 = vst [vmem:[%s556_s3 + $0x10] sm:$0xff] %v231_v46   ;;  %v126_v59 = vmax.f32 %v94_v50, 0.0  ;;  %v127_v60 = vmax.f32 %v95_v51, 0.0  ;;  %v98_v61 = vadd.f32 %v349_v3, %v62_v52 }
   0xe   :  { %v99_v62 = vadd.f32 %v349_v3, %v63_v53  ;;  %300 = vst [vmem:[%s556_s3 + $0x18] sm:$0xff] %v236_v47   ;;  %v128_v0 = vmax.f32 %v96_v54, 0.0  ;;  %v129_v1 = vmax.f32 %v97_v55, 0.0  ;;  %v100_v4 = vadd.f32 %v349_v3, %v64_v56  ;;  %v44_v54 = vld [vmem:[%s553_s0 + $0xf0] sm:$0xff] }
   0xf   :  { %v101_v5 = vadd.f32 %v349_v3, %v65_v57  ;;  %v241_v8 = vpack.c.bf16 %v127_v60, %v126_v59  ;;  %v130_v9 = vmax.f32 %v98_v61, 0.0  ;;  %v66_v11 = vmul.f32 %v344_v2, %v30_v58  ;;  %v45_v59 = vld [vmem:[%s553_s0 + $0xf8] sm:$0xff] }
  0x10   :  { %v131_v10 = vmax.f32 %v99_v62, 0.0  ;;  %v246_v14 = vpack.c.bf16 %v129_v1, %v128_v0  ;;  %v132_v15 = vmax.f32 %v100_v4, 0.0  ;;  %v67_v17 = vmul.f32 %v344_v2, %v31_v63 }
  0x11   :  { %v133_v16 = vmax.f32 %v101_v5, 0.0  ;;  %301 = vst [vmem:[%s556_s3 + $0x20] sm:$0xff] %v241_v8   ;;  %v102_v20 = vadd.f32 %v349_v3, %v66_v11  ;;  %v68_v21 = vmul.f32 %v344_v2, %v32_v6  ;;  %v69_v22 = vmul.f32 %v344_v2, %v33_v7 }
  0x12   :  { %v251_v19 = vpack.c.bf16 %v131_v10, %v130_v9  ;;  %302 = vst [vmem:[%s556_s3 + $0x28] sm:$0xff] %v246_v14   ;;  %v103_v25 = vadd.f32 %v349_v3, %v67_v17  ;;  %v70_v26 = vmul.f32 %v344_v2, %v34_v12  ;;  %v71_v27 = vmul.f32 %v344_v2, %v35_v13 }
  0x13   :  { %v256_v24 = vpack.c.bf16 %v133_v16, %v132_v15  ;;  %v134_v29 = vmax.f32 %v102_v20, 0.0  ;;  %v104_v30 = vadd.f32 %v349_v3, %v68_v21  ;;  %v105_v31 = vadd.f32 %v349_v3, %v69_v22 }
  0x14   :  { %303 = vst [vmem:[%s556_s3 + $0x30] sm:$0xff] %v251_v19   ;;  %v72_v32 = vmul.f32 %v344_v2, %v36_v18  ;;  %v135_v33 = vmax.f32 %v103_v25, 0.0  ;;  %v106_v34 = vadd.f32 %v349_v3, %v70_v26  ;;  %v107_v35 = vadd.f32 %v349_v3, %v71_v27 }
  0x15   :  { %304 = vst [vmem:[%s556_s3 + $0x38] sm:$0xff] %v256_v24   ;;  %v73_v36 = vmul.f32 %v344_v2, %v37_v23  ;;  %v136_v38 = vmax.f32 %v104_v30, 0.0  ;;  %v137_v39 = vmax.f32 %v105_v31, 0.0  ;;  %v74_v41 = vmul.f32 %v344_v2, %v38_v28 }
  0x16   :  { %v108_v40 = vadd.f32 %v349_v3, %v72_v32  ;;  %v261_v44 = vpack.c.bf16 %v135_v33, %v134_v29  ;;  %v138_v45 = vmax.f32 %v106_v34, 0.0  ;;  %v139_v46 = vmax.f32 %v107_v35, 0.0 }
  0x17   :  { %v109_v47 = vadd.f32 %v349_v3, %v73_v36  ;;  %v266_v50 = vpack.c.bf16 %v137_v39, %v136_v38  ;;  %v75_v52 = vmul.f32 %v344_v2, %v39_v37  ;;  %v110_v53 = vadd.f32 %v349_v3, %v74_v41 }
  0x18   :  { %v140_v51 = vmax.f32 %v108_v40, 0.0  ;;  %305 = vst [vmem:[%s556_s3 + $0x40] sm:$0xff] %v261_v44   ;;  %v271_v55 = vpack.c.bf16 %v139_v46, %v138_v45  ;;  %v76_v57 = vmul.f32 %v344_v2, %v40_v42  ;;  %v77_v58 = vmul.f32 %v344_v2, %v41_v43 }
  0x19   :  { %v141_v56 = vmax.f32 %v109_v47, 0.0  ;;  %306 = vst [vmem:[%s556_s3 + $0x48] sm:$0xff] %v266_v50   ;;  %v111_v60 = vadd.f32 %v349_v3, %v75_v52  ;;  %v142_v61 = vmax.f32 %v110_v53, 0.0  ;;  %v78_v62 = vmul.f32 %v344_v2, %v42_v48 }
  0x1a   :  { %v79_v63 = vmul.f32 %v344_v2, %v43_v49  ;;  %307 = vst [vmem:[%s556_s3 + $0x50] sm:$0xff] %v271_v55   ;;  %v112_v1 = vadd.f32 %v349_v3, %v76_v57  ;;  %v113_v4 = vadd.f32 %v349_v3, %v77_v58  ;;  %v80_v5 = vmul.f32 %v344_v2, %v44_v54 }
  0x1b   :  { %v276_v0 = vpack.c.bf16 %v141_v56, %v140_v51  ;;  %v143_v6 = vmax.f32 %v111_v60, 0.0  ;;  %v114_v7 = vadd.f32 %v349_v3, %v78_v62  ;;  %v81_v9 = vmul.f32 %v344_v2, %v45_v59 }
  0x1c   :  { %v115_v8 = vadd.f32 %v349_v3, %v79_v63  ;;  %v144_v10 = vmax.f32 %v112_v1, 0.0  ;;  %v145_v11 = vmax.f32 %v113_v4, 0.0  ;;  %v116_v12 = vadd.f32 %v349_v3, %v80_v5 }
  0x1d   :  { %308 = vst [vmem:[%s556_s3 + $0x58] sm:$0xff] %v276_v0   ;;  %v281_v13 = vpack.c.bf16 %v143_v6, %v142_v61  ;;  %v146_v14 = vmax.f32 %v114_v7, 0.0  ;;  %v117_v16 = vadd.f32 %v349_v3, %v81_v9 }
  0x1e   :  { %v147_v15 = vmax.f32 %v115_v8, 0.0  ;;  %v286_v17 = vpack.c.bf16 %v145_v11, %v144_v10  ;;  %v148_v18 = vmax.f32 %v116_v12, 0.0 }
  0x1f   :  { %309 = vst [vmem:[%s556_s3 + $0x60] sm:$0xff] %v281_v13   ;;  %v149_v19 = vmax.f32 %v117_v16, 0.0 }
  0x20   :  { %v291_v2 = vpack.c.bf16 %v147_v15, %v146_v14  ;;  %310 = vst [vmem:[%s556_s3 + $0x68] sm:$0xff] %v286_v17  }
  0x21   :  { %v296_v20 = vpack.c.bf16 %v149_v19, %v148_v18 }
  0x22   :  { %311 = vst [vmem:[%s556_s3 + $0x70] sm:$0xff] %v291_v2  }
  0x23   :  { %312 = vst [vmem:[%s556_s3 + $0x78] sm:$0xff] %v296_v20  }

// kernel: conv3d_block_fwd.3
= control target key start
LH: loop header
LB: loop body
LE: loop exit
PB: predicated region body
PF: predicated region fallthrough
CT: control target
= control target key end

     0   :  { %s1366_s9 = smov 0   ;;  %s1368_s10 = smov 0   ;;  %s1530_s0 = inlined_call_operand.vmem [shape: bf16[8192,128], index: 0, kind: input, shape index: {}]   ;;  %s1531_s1 = inlined_call_operand.vmem [shape: bf16[128,128], index: 1, kind: input, shape index: {}]   ;;  %s1532_s2 = inlined_call_operand.vmem [shape: f32[8192,128], index: 2, kind: output, shape index: {}]  }
   0x1   :  { %s1370_s11 = smov 0  }
   0x2 LB: > { %s31_s12 = sadd.s32 1, %s1345_s10  ;;  %p1071_p0 = scmp.ge.s32.totalorder %s1349_s11, 1  ;;  %s1349_s11 = sphi %s1370_s11, %s12_s11   ;;  %s1345_s10 = sphi %s1368_s10, %s1534_s10   ;;  %s1341_s9 = sphi %s1366_s9, %s1533_s9  }
   0x3   : > { %p33_p1 = scmp.ge.s32.totalorder %s31_s12, 16  ;;  %p155_p2 = scmp.lt.s32.totalorder %s1349_s11, 17 }
   0x5   : > { %s1536_s12 = smov (%p33_p1, %s31_s12), 0  ;;  %p156_p3 = pnand %p1071_p0, %p155_p2 }
   0x6   : > { %s1072_s21 = sshll.u32 (!%p156_p3), %s1341_s9, 6 }
   0x7   : > { %159 = sbr.rel (%p156_p3) target bundleno = 299 (0x12b), region = 28  ;;  %p192_p4 = scmp.lt.s32.totalorder (!%p156_p3), %s1072_s21, 1023 }
   0xc   : > { %v1277_v0 = vld [vmem:[%s1531_s1 + $0x38] sm:$0xff]  ;;  %v1276_v1 = vld [vmem:[%s1531_s1 + $0x30] sm:$0xff]  ;;  %v1275_v2 = vld [vmem:[%s1531_s1 + $0x28] sm:$0xff]  ;;  %s1538_s21 = smov (!%p192_p4, %s1072_s21), 1023 }
   0xd   : > { %670 = vmatpush.bf16.msra.mxu0 %v1277_v0  ;;  %1278 = vmatpush.bf16.msra.mxu1 %v1277_v0  ;;  %v1274_v3 = vld [vmem:[%s1531_s1 + $0x20] sm:$0xff]  ;;  %v1273_v4 = vld [vmem:[%s1531_s1 + $0x18] sm:$0xff]  ;;  %v1272_v5 = vld [vmem:[%s1531_s1 + $0x10] sm:$0xff]  ;;  %s1073_s28 = sshll.u32 %s1538_s21, 2  ;;  %s1075_s6 = sshll.u32 %s1538_s21, 3 }
   0xe   : > { %1279 = vmatpush.bf16.msra.mxu2 %v1277_v0  ;;  %1280 = vmatpush.bf16.msra.mxu3 %v1277_v0  ;;  %v1271_v6 = vld [vmem:[%s1531_s1 + $0x8] sm:$0xff]  ;;  %v1270_v7 = vld [vmem:[%s1531_s1] sm:$0xff]  ;;  %s1417_s5 = scalar_lea.vmem %s1530_s0, %s1073_s28  ;;  %s1455_s9 = scalar_lea.vmem %s1532_s2, %s1075_s6 }
   0xf   : > { %v1238_v8 = vld [vmem:[%s1417_s5] sm:$0xff]  ;;  %v1239_v12 = vld [vmem:[%s1417_s5 + $0x8] sm:$0xff]  ;;  %v1240_v16 = vld [vmem:[%s1417_s5 + $0x10] sm:$0xff] }
  0x10   : > { %v1246_v9 = vld [vmem:[%s1417_s5 + $0x40] sm:$0xff]  ;;  %v1247_v13 = vld [vmem:[%s1417_s5 + $0x48] sm:$0xff]  ;;  %v1248_v17 = vld [vmem:[%s1417_s5 + $0x50] sm:$0xff] }
  0x11   : > { %671 = vmatpush.bf16.msra.mxu0 %v1276_v1  ;;  %1281 = vmatpush.bf16.msra.mxu1 %v1276_v1  ;;  %v1254_v10 = vld [vmem:[%s1417_s5 + $0x80] sm:$0xff]  ;;  %v1255_v14 = vld [vmem:[%s1417_s5 + $0x88] sm:$0xff]  ;;  %v1256_v18 = vld [vmem:[%s1417_s5 + $0x90] sm:$0xff] }
  0x12   : > { %1282 = vmatpush.bf16.msra.mxu2 %v1276_v1  ;;  %1283 = vmatpush.bf16.msra.mxu3 %v1276_v1  ;;  %v1262_v11 = vld [vmem:[%s1417_s5 + $0xc0] sm:$0xff]  ;;  %v1263_v15 = vld [vmem:[%s1417_s5 + $0xc8] sm:$0xff]  ;;  %v1264_v19 = vld [vmem:[%s1417_s5 + $0xd0] sm:$0xff] }
  0x13   : > { %v1241_v20 = vld [vmem:[%s1417_s5 + $0x18] sm:$0xff]  ;;  %v1242_v24 = vld [vmem:[%s1417_s5 + $0x20] sm:$0xff]  ;;  %v1243_v28 = vld [vmem:[%s1417_s5 + $0x28] sm:$0xff] }
  0x14   : > { %v1249_v21 = vld [vmem:[%s1417_s5 + $0x58] sm:$0xff]  ;;  %v1250_v25 = vld [vmem:[%s1417_s5 + $0x60] sm:$0xff]  ;;  %v1251_v29 = vld [vmem:[%s1417_s5 + $0x68] sm:$0xff] }
  0x15   : > { %672 = vmatpush.bf16.msra.mxu0 %v1275_v2  ;;  %1284 = vmatpush.bf16.msra.mxu1 %v1275_v2  ;;  %v1257_v22 = vld [vmem:[%s1417_s5 + $0x98] sm:$0xff]  ;;  %v1258_v26 = vld [vmem:[%s1417_s5 + $0xa0] sm:$0xff]  ;;  %v1259_v30 = vld [vmem:[%s1417_s5 + $0xa8] sm:$0xff] }
  0x16   : > { %1285 = vmatpush.bf16.msra.mxu2 %v1275_v2  ;;  %1286 = vmatpush.bf16.msra.mxu3 %v1275_v2  ;;  %v1265_v23 = vld [vmem:[%s1417_s5 + $0xd8] sm:$0xff]  ;;  %v1266_v27 = vld [vmem:[%s1417_s5 + $0xe0] sm:$0xff]  ;;  %v1267_v31 = vld [vmem:[%s1417_s5 + $0xe8] sm:$0xff] }
  0x17   : > { %v1244_v32 = vld [vmem:[%s1417_s5 + $0x30] sm:$0xff]  ;;  %v1245_v36 = vld [vmem:[%s1417_s5 + $0x38] sm:$0xff] }
  0x18   : > { %v1252_v33 = vld [vmem:[%s1417_s5 + $0x70] sm:$0xff]  ;;  %v1253_v37 = vld [vmem:[%s1417_s5 + $0x78] sm:$0xff] }
  0x19   : > { %673 = vmatpush.bf16.msra.mxu0 %v1274_v3  ;;  %1287 = vmatpush.bf16.msra.mxu1 %v1274_v3  ;;  %v1260_v34 = vld [vmem:[%s1417_s5 + $0xb0] sm:$0xff]  ;;  %v1261_v38 = vld [vmem:[%s1417_s5 + $0xb8] sm:$0xff] }
  0x1a   : > { %1288 = vmatpush.bf16.msra.mxu2 %v1274_v3  ;;  %1289 = vmatpush.bf16.msra.mxu3 %v1274_v3  ;;  %v1268_v35 = vld [vmem:[%s1417_s5 + $0xf0] sm:$0xff]  ;;  %v1269_v39 = vld [vmem:[%s1417_s5 + $0xf8] sm:$0xff] }
  0x1d   : > { %674 = vmatpush.bf16.msra.mxu0 %v1273_v4  ;;  %1290 = vmatpush.bf16.msra.mxu1 %v1273_v4 }
  0x1e   : > { %1291 = vmatpush.bf16.msra.mxu2 %v1273_v4  ;;  %1292 = vmatpush.bf16.msra.mxu3 %v1273_v4 }
  0x21   : > { %675 = vmatpush.bf16.msra.mxu0 %v1272_v5  ;;  %1293 = vmatpush.bf16.msra.mxu1 %v1272_v5 }
  0x22   : > { %1294 = vmatpush.bf16.msra.mxu2 %v1272_v5  ;;  %1295 = vmatpush.bf16.msra.mxu3 %v1272_v5 }
  0x25   : > { %676 = vmatpush.bf16.msra.mxu0 %v1271_v6  ;;  %1296 = vmatpush.bf16.msra.mxu1 %v1271_v6 }
  0x26   : > { %1297 = vmatpush.bf16.msra.mxu2 %v1271_v6  ;;  %1298 = vmatpush.bf16.msra.mxu3 %v1271_v6 }
  0x29   : > { %677 = vmatpush.bf16.msra.mxu0 %v1270_v7  ;;  %1299 = vmatpush.bf16.msra.mxu1 %v1270_v7 }
  0x2a   : > { %1300 = vmatpush.bf16.msra.mxu2 %v1270_v7  ;;  %1301 = vmatpush.bf16.msra.mxu3 %v1270_v7 }
  0x2c   : > { %678 = vmatmul.bf16.vlgmr.msra.gmra.mxu0 %v1238_v8  ;;  %718 = vmatmul.bf16.vlgmr.msra.gmra.mxu1 %v1246_v9 }
  0x2d   : > { %758 = vmatmul.bf16.vlgmr.msra.gmra.mxu2 %v1254_v10  ;;  %798 = vmatmul.bf16.vlgmr.msra.gmra.mxu3 %v1262_v11 }
  0x3c   : > { %683 = vmatmul.bf16.gmra.mxu0 %v1239_v12  ;;  %723 = vmatmul.bf16.gmra.mxu1 %v1247_v13 }
  0x3d   : > { %763 = vmatmul.bf16.gmra.mxu2 %v1255_v14  ;;  %803 = vmatmul.bf16.gmra.mxu3 %v1263_v15 }
  0x4c   : > { %688 = vmatmul.bf16.gmra.mxu0 %v1240_v16  ;;  %728 = vmatmul.bf16.gmra.mxu1 %v1248_v17 }
  0x4d   : > { %768 = vmatmul.bf16.gmra.mxu2 %v1256_v18  ;;  %808 = vmatmul.bf16.gmra.mxu3 %v1264_v19 }
  0x5c   : > { %693 = vmatmul.bf16.gmra.mxu0 %v1241_v20  ;;  %733 = vmatmul.bf16.gmra.mxu1 %v1249_v21 }
  0x5d   : > { %773 = vmatmul.bf16.gmra.mxu2 %v1257_v22  ;;  %813 = vmatmul.bf16.gmra.mxu3 %v1265_v23 }
  0x6c   : > { %698 = vmatmul.bf16.gmra.mxu0 %v1242_v24  ;;  %738 = vmatmul.bf16.gmra.mxu1 %v1250_v25 }
  0x6d   : > { %778 = vmatmul.bf16.gmra.mxu2 %v1258_v26  ;;  %818 = vmatmul.bf16.gmra.mxu3 %v1266_v27 }
  0x7c   : > { %703 = vmatmul.bf16.gmra.mxu0 %v1243_v28  ;;  %743 = vmatmul.bf16.gmra.mxu1 %v1251_v29 }
  0x7d   : > { %783 = vmatmul.bf16.gmra.mxu2 %v1259_v30  ;;  %823 = vmatmul.bf16.gmra.mxu3 %v1267_v31 }
  0x8c   : > { %708 = vmatmul.bf16.gmra.mxu0 %v1244_v32  ;;  %748 = vmatmul.bf16.gmra.mxu1 %v1252_v33 }
  0x8d   : > { %788 = vmatmul.bf16.gmra.mxu2 %v1260_v34  ;;  %828 = vmatmul.bf16.gmra.mxu3 %v1268_v35 }
  0x9c   : > { %713 = vmatmul.bf16.gmra.mxu0 %v1245_v36  ;;  %753 = vmatmul.bf16.gmra.mxu1 %v1253_v37 }
  0x9d   : > { %793 = vmatmul.bf16.gmra.mxu2 %v1261_v38  ;;  %833 = vmatmul.bf16.gmra.mxu3 %v1269_v39 }
  0xa9   : > { %v679_v40 = vpop.f32.mrf.mxu0  ;;  %v719_v41 = vpop.f32.mrf.mxu1 }
  0xaa   : > { %903 = vst [vmem:[%s1455_s9] sm:$0xff] %v679_v40 }
  0xab   : > { %919 = vst [vmem:[%s1455_s9 + $0x80] sm:$0xff] %v719_v41 }
  0xb0   : > { %v759_v42 = vpop.f32.mrf.mxu2  ;;  %v799_v43 = vpop.f32.mrf.mxu3 }
  0xb1   : > { %v681_v44 = vpop.f32.mrf.mxu0  ;;  %v721_v45 = vpop.f32.mrf.mxu1  ;;  %935 = vst [vmem:[%s1455_s9 + $0x100] sm:$0xff] %v759_v42 }
  0xb2   : > { %951 = vst [vmem:[%s1455_s9 + $0x180] sm:$0xff] %v799_v43 }
  0xb3   : > { %904 = vst [vmem:[%s1455_s9 + $0x8] sm:$0xff] %v681_v44 }
  0xb4   : > { %920 = vst [vmem:[%s1455_s9 + $0x88] sm:$0xff] %v721_v45 }
  0xb8   : > { %v761_v46 = vpop.f32.mrf.mxu2  ;;  %v801_v47 = vpop.f32.mrf.mxu3 }
  0xb9   : > { %v684_v48 = vpop.f32.mrf.mxu0  ;;  %v724_v49 = vpop.f32.mrf.mxu1  ;;  %936 = vst [vmem:[%s1455_s9 + $0x108] sm:$0xff] %v761_v46 }
  0xba   : > { %952 = vst [vmem:[%s1455_s9 + $0x188] sm:$0xff] %v801_v47 }
  0xbb   : > { %905 = vst [vmem:[%s1455_s9 + $0x10] sm:$0xff] %v684_v48 }
  0xbc   : > { %921 = vst [vmem:[%s1455_s9 + $0x90] sm:$0xff] %v724_v49 }
  0xc0   : > { %v764_v50 = vpop.f32.mrf.mxu2  ;;  %v804_v51 = vpop.f32.mrf.mxu3 }
  0xc1   : > { %v686_v52 = vpop.f32.mrf.mxu0  ;;  %v726_v53 = vpop.f32.mrf.mxu1  ;;  %937 = vst [vmem:[%s1455_s9 + $0x110] sm:$0xff] %v764_v50 }
  0xc2   : > { %953 = vst [vmem:[%s1455_s9 + $0x190] sm:$0xff] %v804_v51 }
  0xc3   : > { %906 = vst [vmem:[%s1455_s9 + $0x18] sm:$0xff] %v686_v52 }
  0xc4   : > { %922 = vst [vmem:[%s1455_s9 + $0x98] sm:$0xff] %v726_v53 }
  0xc8   : > { %v766_v54 = vpop.f32.mrf.mxu2  ;;  %v806_v55 = vpop.f32.mrf.mxu3 }
  0xc9   : > { %v689_v56 = vpop.f32.mrf.mxu0  ;;  %v729_v57 = vpop.f32.mrf.mxu1  ;;  %938 = vst [vmem:[%s1455_s9 + $0x118] sm:$0xff] %v766_v54 }
  0xca   : > { %954 = vst [vmem:[%s1455_s9 + $0x198] sm:$0xff] %v806_v55 }
  0xcb   : > { %907 = vst [vmem:[%s1455_s9 + $0x20] sm:$0xff] %v689_v56 }
  0xcc   : > { %923 = vst [vmem:[%s1455_s9 + $0xa0] sm:$0xff] %v729_v57 }
  0xd0   : > { %v769_v58 = vpop.f32.mrf.mxu2  ;;  %v809_v59 = vpop.f32.mrf.mxu3 }
  0xd1   : > { %v691_v60 = vpop.f32.mrf.mxu0  ;;  %v731_v61 = vpop.f32.mrf.mxu1  ;;  %939 = vst [vmem:[%s1455_s9 + $0x120] sm:$0xff] %v769_v58 }
  0xd2   : > { %955 = vst [vmem:[%s1455_s9 + $0x1a0] sm:$0xff] %v809_v59 }
  0xd3   : > { %908 = vst [vmem:[%s1455_s9 + $0x28] sm:$0xff] %v691_v60 }
  0xd4   : > { %924 = vst [vmem:[%s1455_s9 + $0xa8] sm:$0xff] %v731_v61 }
  0xd8   : > { %v771_v62 = vpop.f32.mrf.mxu2  ;;  %v811_v63 = vpop.f32.mrf.mxu3 }
  0xd9   : > { %v694_v0 = vpop.f32.mrf.mxu0  ;;  %v734_v1 = vpop.f32.mrf.mxu1  ;;  %940 = vst [vmem:[%s1455_s9 + $0x128] sm:$0xff] %v771_v62 }
  0xda   : > { %956 = vst [vmem:[%s1455_s9 + $0x1a8] sm:$0xff] %v811_v63 }
  0xdb   : > { %909 = vst [vmem:[%s1455_s9 + $0x30] sm:$0xff] %v694_v0 }
  0xdc   : > { %925 = vst [vmem:[%s1455_s9 + $0xb0] sm:$0xff] %v734_v1 }
  0xe0   : > { %v774_v2 = vpop.f32.mrf.mxu2  ;;  %v814_v3 = vpop.f32.mrf.mxu3 }
  0xe1   : > { %v696_v4 = vpop.f32.mrf.mxu0  ;;  %v736_v5 = vpop.f32.mrf.mxu1  ;;  %941 = vst [vmem:[%s1455_s9 + $0x130] sm:$0xff] %v774_v2 }
  0xe2   : > { %957 = vst [vmem:[%s1455_s9 + $0x1b0] sm:$0xff] %v814_v3 }
  0xe3   : > { %910 = vst [vmem:[%s1455_s9 + $0x38] sm:$0xff] %v696_v4 }
  0xe4   : > { %926 = vst [vmem:[%s1455_s9 + $0xb8] sm:$0xff] %v736_v5 }
  0xe8   : > { %v776_v6 = vpop.f32.mrf.mxu2  ;;  %v816_v7 = vpop.f32.mrf.mxu3 }
  0xe9   : > { %v699_v8 = vpop.f32.mrf.mxu0  ;;  %v739_v9 = vpop.f32.mrf.mxu1  ;;  %942 = vst [vmem:[%s1455_s9 + $0x138] sm:$0xff] %v776_v6 }
  0xea   : > { %958 = vst [vmem:[%s1455_s9 + $0x1b8] sm:$0xff] %v816_v7 }
  0xeb   : > { %911 = vst [vmem:[%s1455_s9 + $0x40] sm:$0xff] %v699_v8 }
  0xec   : > { %927 = vst [vmem:[%s1455_s9 + $0xc0] sm:$0xff] %v739_v9 }
  0xf0   : > { %v779_v10 = vpop.f32.mrf.mxu2  ;;  %v819_v11 = vpop.f32.mrf.mxu3 }
  0xf1   : > { %v701_v12 = vpop.f32.mrf.mxu0  ;;  %v741_v13 = vpop.f32.mrf.mxu1  ;;  %943 = vst [vmem:[%s1455_s9 + $0x140] sm:$0xff] %v779_v10 }
  0xf2   : > { %959 = vst [vmem:[%s1455_s9 + $0x1c0] sm:$0xff] %v819_v11 }
  0xf3   : > { %912 = vst [vmem:[%s1455_s9 + $0x48] sm:$0xff] %v701_v12 }
  0xf4   : > { %928 = vst [vmem:[%s1455_s9 + $0xc8] sm:$0xff] %v741_v13 }
  0xf8   : > { %v781_v14 = vpop.f32.mrf.mxu2  ;;  %v821_v15 = vpop.f32.mrf.mxu3 }
  0xf9   : > { %v704_v16 = vpop.f32.mrf.mxu0  ;;  %v744_v17 = vpop.f32.mrf.mxu1  ;;  %944 = vst [vmem:[%s1455_s9 + $0x148] sm:$0xff] %v781_v14 }
  0xfa   : > { %960 = vst [vmem:[%s1455_s9 + $0x1c8] sm:$0xff] %v821_v15 }
  0xfb   : > { %913 = vst [vmem:[%s1455_s9 + $0x50] sm:$0xff] %v704_v16 }
  0xfc   : > { %929 = vst [vmem:[%s1455_s9 + $0xd0] sm:$0xff] %v744_v17 }
 0x100   : > { %v784_v18 = vpop.f32.mrf.mxu2  ;;  %v824_v19 = vpop.f32.mrf.mxu3 }
 0x101   : > { %v706_v20 = vpop.f32.mrf.mxu0  ;;  %v746_v21 = vpop.f32.mrf.mxu1  ;;  %945 = vst [vmem:[%s1455_s9 + $0x150] sm:$0xff] %v784_v18 }
 0x102   : > { %961 = vst [vmem:[%s1455_s9 + $0x1d0] sm:$0xff] %v824_v19 }
 0x103   : > { %914 = vst [vmem:[%s1455_s9 + $0x58] sm:$0xff] %v706_v20 }
 0x104   : > { %930 = vst [vmem:[%s1455_s9 + $0xd8] sm:$0xff] %v746_v21 }
 0x108   : > { %v786_v22 = vpop.f32.mrf.mxu2  ;;  %v826_v23 = vpop.f32.mrf.mxu3 }
 0x109   : > { %v709_v24 = vpop.f32.mrf.mxu0  ;;  %v749_v25 = vpop.f32.mrf.mxu1  ;;  %946 = vst [vmem:[%s1455_s9 + $0x158] sm:$0xff] %v786_v22 }
 0x10a   : > { %962 = vst [vmem:[%s1455_s9 + $0x1d8] sm:$0xff] %v826_v23 }
 0x10b   : > { %915 = vst [vmem:[%s1455_s9 + $0x60] sm:$0xff] %v709_v24 }
 0x10c   : > { %931 = vst [vmem:[%s1455_s9 + $0xe0] sm:$0xff] %v749_v25 }
 0x110   : > { %v789_v26 = vpop.f32.mrf.mxu2  ;;  %v829_v27 = vpop.f32.mrf.mxu3 }
 0x111   : > { %v711_v28 = vpop.f32.mrf.mxu0  ;;  %v751_v29 = vpop.f32.mrf.mxu1  ;;  %947 = vst [vmem:[%s1455_s9 + $0x160] sm:$0xff] %v789_v26 }
 0x112   : > { %963 = vst [vmem:[%s1455_s9 + $0x1e0] sm:$0xff] %v829_v27 }
 0x113   : > { %916 = vst [vmem:[%s1455_s9 + $0x68] sm:$0xff] %v711_v28 }
 0x114   : > { %932 = vst [vmem:[%s1455_s9 + $0xe8] sm:$0xff] %v751_v29 }
 0x118   : > { %v791_v30 = vpop.f32.mrf.mxu2  ;;  %v831_v31 = vpop.f32.mrf.mxu3 }
 0x119   : > { %v714_v32 = vpop.f32.mrf.mxu0  ;;  %v754_v33 = vpop.f32.mrf.mxu1  ;;  %948 = vst [vmem:[%s1455_s9 + $0x168] sm:$0xff] %v791_v30 }
 0x11a   : > { %964 = vst [vmem:[%s1455_s9 + $0x1e8] sm:$0xff] %v831_v31 }
 0x11b   : > { %917 = vst [vmem:[%s1455_s9 + $0x70] sm:$0xff] %v714_v32 }
 0x11c   : > { %933 = vst [vmem:[%s1455_s9 + $0xf0] sm:$0xff] %v754_v33 }
 0x120   : > { %v794_v34 = vpop.f32.mrf.mxu2  ;;  %v834_v35 = vpop.f32.mrf.mxu3 }
 0x121   : > { %v716_v36 = vpop.f32.mrf.mxu0  ;;  %v756_v37 = vpop.f32.mrf.mxu1  ;;  %949 = vst [vmem:[%s1455_s9 + $0x170] sm:$0xff] %v794_v34 }
 0x122   : > { %965 = vst [vmem:[%s1455_s9 + $0x1f0] sm:$0xff] %v834_v35 }
 0x123   : > { %918 = vst [vmem:[%s1455_s9 + $0x78] sm:$0xff] %v716_v36 }
 0x124   : > { %934 = vst [vmem:[%s1455_s9 + $0xf8] sm:$0xff] %v756_v37 }
 0x128   : > { %v796_v38 = vpop.f32.mrf.mxu2  ;;  %v836_v39 = vpop.f32.mrf.mxu3 }
 0x129   : > { %950 = vst [vmem:[%s1455_s9 + $0x178] sm:$0xff] %v796_v38 }
 0x12a   : > { %966 = vst [vmem:[%s1455_s9 + $0x1f8] sm:$0xff] %v836_v39 }
 0x12b PF: > { %s12_s11 = sadd.s32 1, %s1349_s11   ;;  %s1533_s9 = smov %s1345_s10 }
 0x12c   : > { %p9_p5 = scmp.ge.s32.totalorder %s12_s11, 18   ;;  %s1534_s10 = smov %s1536_s12 }
 0x12e   :  { %11 = sbr.rel (!%p9_p5) target bundleno = 2 (0x2), region = 65 }

</bundles_post_ra>
